<compile_context>
chip_gen: v5e
topology: v5e:2x2
jax: 0.10.0
libtpu: 0.0.40
codegen_flags: <defaults>
</compile_context>

<pallas_src>
import functools

import jax
import jax.numpy as jnp
from jax.experimental import pallas as pl
from jax.experimental.pallas import tpu as pltpu


def _elu(x):
    # nn.functional.elu with alpha=1.0 (exp(x)-1; expm1 would be a few ulps closer).
    return jnp.where(x > 0, x, jnp.exp(x) - 1.0)


def _lstm_mlp_kernel(x_ref, wihb_ref, whh_ref, b_ref, w1_ref, b1_ref, w2_ref, b2_ref,
                     out_ref, ht_ref, *, hidden_size, lookback, lookfuture):
    """One grid step runs a tile of BN rows through the LSTM recurrence + MLP head.

    x_ref   : (tile, lookback*F + 1)          input slab, trailing ones column (bias fold)
    wihb_ref: (lookback*F + 1, lookback*4H)   [kron(I, W_ih^T); tiled bias], i/f/o cols *0.5
    whh_ref : (H, 4H)                         W_hh^T, i/f/o cols *0.5
    b_ref   : (1, 4H)                         b_ih + b_hh, i/f/o cols *0.5
    w1_ref  : (H, H), b1_ref (H, 1)           linear_1 (original (out, in) orientation)
    w2_ref  : (O, H), b2_ref (O, 1)           linear   (original (out, in) orientation)
    out_ref : (lookfuture*O, tile)            row j*O + o  <->  (tail step j, output o)
    ht_ref  : (H, lookfuture*tile) VMEM       transposed tail hidden states
    """
    tile = x_ref.shape[0]
    H = hidden_size
    H4 = 4 * H
    T = lookback + lookfuture - 1
    O = out_ref.shape[0] // lookfuture

    whh = whh_ref[...]

    # Hoisted constants (JAX does not CSE broadcasts inside the unrolled loop).
    lane = jax.lax.broadcasted_iota(jnp.int32, (tile, H4), 1)
    g_lane = (lane >= 2 * H) & (lane < 3 * H)
    g_scale = jnp.where(g_lane, 1.0, 0.5).astype(jnp.float32)
    g_shift = jnp.where(g_lane, 0.0, 0.5).astype(jnp.float32)
    b_bcast = jnp.broadcast_to(b_ref[...], (tile, H4))       # only used for t >= lookback

    # Hoisted input projection (+ bias via the ones column): all lookback steps in one
    # MXU matmul; per-step slices below are 128-lane aligned.
    xgb = jnp.dot(x_ref[...], wihb_ref[...], preferred_element_type=jnp.float32)

    c = None
    h = None
    for t in range(T):                          # small static trip count -> unrolled
        if t == 0:
            gates = xgb[:, 0:H4]                # h == 0: skip the recurrent matmul
        else:
            gates = jnp.dot(h, whh, preferred_element_type=jnp.float32)
            if t < lookback:
                gates = gates + xgb[:, t * H4:(t + 1) * H4]
            else:                               # zero "future" input: only the bias remains
                gates = gates + b_bcast
        # One full-width tanh per step: i/f/o pre-activations were pre-scaled by 0.5,
        # so sigmoid(x) = 0.5*tanh(x/2) + 0.5 = tanh(gates)*0.5 + 0.5 on those lanes,
        # and the g (cell) lanes stay tanh(gates).
        act = jnp.tanh(gates) * g_scale + g_shift
        i_g = act[:, 0:H]
        f_g = act[:, H:2 * H]
        g_g = act[:, 2 * H:3 * H]
        o_g = act[:, 3 * H:H4]
        c = i_g * g_g if t == 0 else f_g * c + i_g * g_g
        h = o_g * jnp.tanh(c)
        j = t - (T - lookfuture)
        if j >= 0:                              # keep only the tail we will output
            ht_ref[:, j * tile:(j + 1) * tile] = h.T

    # Batched MLP head in the transposed (lane-dense) domain:
    #   y^T = W2 @ elu(W1 @ elu(h^T) + b1) + b2
    a1 = _elu(ht_ref[...])                                                # (H, LF*tile)
    z = jnp.dot(w1_ref[...], a1, preferred_element_type=jnp.float32) + b1_ref[...]
    a2 = _elu(z)
    yt = jnp.dot(w2_ref[...], a2, preferred_element_type=jnp.float32) + b2_ref[...]   # (O, LF*tile)
    for j in range(lookfuture):
        out_ref[j * O:(j + 1) * O, :] = yt[:, j * tile:(j + 1) * tile]


def _round_up(v, m):
    return ((v + m - 1) // m) * m


def _pick_row_tiling(bn):
    """Return (tile, num_tiles).

    Tiny problems get a single tile; otherwise >= 2 tiles so v7x's two TensorCores
    both get work on the "parallel" axis, tile a multiple of 128 so the lane-dense
    (lookfuture*O, tile) output block stays unmasked, capped at 512 rows/tile.
    """
    bn8 = _round_up(bn, 8)
    if bn8 <= 128:
        return bn8, 1
    num_tiles = max(2, -(-bn8 // 512))
    tile = min(512, _round_up(-(-bn8 // num_tiles), 128))
    bn_pad = _round_up(bn8, tile)
    return tile, bn_pad // tile


def model_citylearn_forward(x, params, *, lookback, lookfuture, hidden_size, output_size):
    """Pallas-backed equivalent of ModelCityLearn.forward."""
    B, N, LB, F = x.shape
    assert LB == lookback
    BN = B * N
    H = hidden_size
    O = output_size

    tile, num_tiles = _pick_row_tiling(BN)
    BN_pad = tile * num_tiles

    # Lane-contiguous input slab (free reshape of the row-major input) + ones column
    # so the combined LSTM bias folds into the hoisted input projection.
    x2d = x.reshape(BN, LB * F).astype(jnp.float32)
    x2d = jnp.concatenate([x2d, jnp.ones((BN, 1), jnp.float32)], axis=1)
    if BN_pad != BN:
        x2d = jnp.pad(x2d, ((0, BN_pad - BN), (0, 0)))

    b = (params["b_ih"] + params["b_hh"]).astype(jnp.float32)             # (4H,)
    wih_t = params["w_ih"].T.astype(jnp.float32)                          # (F, 4H)
    # Block-diagonal projection weight + a bias row: one matmul projects all lookback
    # steps and adds the bias.
    wih_blk = jnp.concatenate(
        [jnp.kron(jnp.eye(LB, dtype=jnp.float32), wih_t),
         jnp.tile(b.reshape(1, 4 * H), (1, LB))], axis=0)                 # (LB*F+1, LB*4H)
    whh_t = params["w_hh"].T.astype(jnp.float32)                          # (H, 4H)
    b_row = b.reshape(1, 4 * H)

    # Pre-scale the i/f/o gate columns by 0.5 so the kernel only needs
    # act = tanh(gates) * g_scale + g_shift (sigmoid(x) = 0.5*tanh(x/2) + 0.5).
    col = jnp.arange(4 * H)
    col_scale = jnp.where((col >= 2 * H) & (col < 3 * H), 1.0, 0.5).astype(jnp.float32)
    whh_t = whh_t * col_scale[None, :]
    b_row = b_row * col_scale[None, :]
    wih_blk = wih_blk * jnp.tile(col_scale, (LB,))[None, :]

    w1 = params["w1"].astype(jnp.float32)                                 # (H, H)
    b1 = params["b1"].reshape(H, 1).astype(jnp.float32)
    w2 = params["w2"].astype(jnp.float32)                                 # (O, H)
    b2 = params["b2"].reshape(O, 1).astype(jnp.float32)

    kernel = functools.partial(_lstm_mlp_kernel, hidden_size=H,
                               lookback=lookback, lookfuture=lookfuture)

    out = pl.pallas_call(
        kernel,
        out_shape=jax.ShapeDtypeStruct((lookfuture * O, BN_pad), jnp.float32),
        grid_spec=pltpu.PrefetchScalarGridSpec(
            num_scalar_prefetch=0,
            grid=(num_tiles,),
            in_specs=[
                pl.BlockSpec((tile, LB * F + 1), lambda i: (i, 0)),
                # Constant index maps: these weight/bias blocks stay resident across
                # grid steps (no per-step re-DMA / pointless multi-buffering).
                pl.BlockSpec(wih_blk.shape, lambda i: (0, 0)),
                pl.BlockSpec(whh_t.shape, lambda i: (0, 0)),
                pl.BlockSpec(b_row.shape, lambda i: (0, 0)),
                pl.BlockSpec(w1.shape, lambda i: (0, 0)),
                pl.BlockSpec(b1.shape, lambda i: (0, 0)),
                pl.BlockSpec(w2.shape, lambda i: (0, 0)),
                pl.BlockSpec(b2.shape, lambda i: (0, 0)),
            ],
            out_specs=pl.BlockSpec((lookfuture * O, tile), lambda i: (0, i)),
            scratch_shapes=[pltpu.VMEM((H, lookfuture * tile), jnp.float32)],
        ),
        compiler_params=pltpu.CompilerParams(dimension_semantics=("parallel",)),
    )(x2d, wih_blk, whh_t, b_row, w1, b1, w2, b2)

    # (lookfuture*O, BN_pad) -> (BN, lookfuture, O), drop pad rows.
    out = jnp.transpose(out.reshape(lookfuture, O, BN_pad), (2, 0, 1))[:BN]
    return out.reshape(B, N, lookfuture, output_size)


def reference_forward(x, params, *, lookback, lookfuture, hidden_size, output_size):
    """Pure-JAX reference mirroring the PyTorch forward (for correctness check)."""
    B, N, _, F = x.shape
    BN = B * N
    H = hidden_size
    T = lookback + lookfuture - 1
    xin = x.reshape(BN, lookback, F).astype(jnp.float32)
    xin = jnp.concatenate([xin, jnp.zeros((BN, lookfuture - 1, F), jnp.float32)], axis=1)
    h = jnp.zeros((BN, H), jnp.float32)
    c = jnp.zeros((BN, H), jnp.float32)
    outs = []
    for t in range(T):
        g = (xin[:, t, :] @ params["w_ih"].T + params["b_ih"]
             + h @ params["w_hh"].T + params["b_hh"])
        i_g = jax.nn.sigmoid(g[:, :H])
        f_g = jax.nn.sigmoid(g[:, H:2 * H])
        g_g = jnp.tanh(g[:, 2 * H:3 * H])
        o_g = jax.nn.sigmoid(g[:, 3 * H:])
        c = f_g * c + i_g * g_g
        h = o_g * jnp.tanh(c)
        outs.append(h)
    hs = jnp.stack(outs, axis=1)                       # (BN, T, H)
    y = _elu(hs)
    y = y @ params["w1"].T + params["b1"]
    y = _elu(y)
    y = y @ params["w2"].T + params["b2"]
    y = y[:, -lookfuture:, :]
    return y.reshape(B, N, lookfuture, output_size)


def init_params(key, input_size, hidden_size, output_size):
    """Deterministic synthetic parameters with PyTorch-default-style uniform init."""
    H = hidden_size
    k = 1.0 / jnp.sqrt(jnp.float32(H))
    keys = jax.random.split(key, 8)
    u = lambda kk, shape: jax.random.uniform(kk, shape, jnp.float32, -k, k)
    return {
        "w_ih": u(keys[0], (4 * H, input_size)),   # lstm1.weight_ih_l0
        "w_hh": u(keys[1], (4 * H, H)),            # lstm1.weight_hh_l0
        "b_ih": u(keys[2], (4 * H,)),              # lstm1.bias_ih_l0
        "b_hh": u(keys[3], (4 * H,)),              # lstm1.bias_hh_l0
        "w1":   u(keys[4], (H, H)),                # linear_1.weight
        "b1":   u(keys[5], (H,)),                  # linear_1.bias
        "w2":   u(keys[6], (output_size, H)),      # linear.weight
        "b2":   u(keys[7], (output_size,)),        # linear.bias
    }


if __name__ == "__main__":
    input_size = 4
    hidden_size = 32
    output_size = 3
    lookback = 8
    lookfuture = 4
    batch = 2
    nb_building = 3

    root = jax.random.PRNGKey(0)
    kx, kp = jax.random.split(root)
    x = jax.random.normal(kx, (batch, nb_building, lookback, input_size), jnp.float32)
    params = init_params(kp, input_size, hidden_size, output_size)

    run = jax.jit(functools.partial(model_citylearn_forward, lookback=lookback,
                                    lookfuture=lookfuture, hidden_size=hidden_size,
                                    output_size=output_size))
    out = run(x, params)
    out = jax.block_until_ready(out)

    ref = reference_forward(x, params, lookback=lookback, lookfuture=lookfuture,
                            hidden_size=hidden_size, output_size=output_size)
    assert out.shape == (batch, nb_building, lookfuture, output_size), out.shape
    assert jnp.allclose(out, ref, atol=5e-5, rtol=5e-5), float(jnp.max(jnp.abs(out - ref)))

    print("KERNEL_OK")
</pallas_src>

<mosaic_0001>
module attributes {stable_mosaic.version = 11 : i64} {
  func.func @_lstm_mlp_kernel(%arg0: i32, %arg1: memref<8x33xf32, #tpu.memory_space<vmem>>, %arg2: memref<33x1024xf32, #tpu.memory_space<vmem>>, %arg3: memref<32x128xf32, #tpu.memory_space<vmem>>, %arg4: memref<1x128xf32, #tpu.memory_space<vmem>>, %arg5: memref<32x32xf32, #tpu.memory_space<vmem>>, %arg6: memref<32x1xf32, #tpu.memory_space<vmem>>, %arg7: memref<3x32xf32, #tpu.memory_space<vmem>>, %arg8: memref<3x1xf32, #tpu.memory_space<vmem>>, %arg9: memref<12x8xf32, #tpu.memory_space<vmem>>, %arg10: memref<32x32xf32, #tpu.memory_space<vmem>>) attributes {dimension_semantics = [#tpu.dimension_semantics<parallel>], iteration_bounds = array<i64: 1>, scalar_prefetch = 0 : i64, scratch_operands = 1 : i64, tpu.core_type = #tpu.core_type<tc>, window_params = [{transform_indices = @transform_0, window_bounds = array<i64: 8, 33>}, {pipeline_mode = #tpu.pipeline_mode<synchronous>, transform_indices = @transform_1, window_bounds = array<i64: 33, 1024>}, {pipeline_mode = #tpu.pipeline_mode<synchronous>, transform_indices = @transform_2, window_bounds = array<i64: 32, 128>}, {pipeline_mode = #tpu.pipeline_mode<synchronous>, transform_indices = @transform_3, window_bounds = array<i64: 1, 128>}, {pipeline_mode = #tpu.pipeline_mode<synchronous>, transform_indices = @transform_4, window_bounds = array<i64: 32, 32>}, {pipeline_mode = #tpu.pipeline_mode<synchronous>, transform_indices = @transform_5, window_bounds = array<i64: 32, 1>}, {pipeline_mode = #tpu.pipeline_mode<synchronous>, transform_indices = @transform_6, window_bounds = array<i64: 3, 32>}, {pipeline_mode = #tpu.pipeline_mode<synchronous>, transform_indices = @transform_7, window_bounds = array<i64: 3, 1>}, {transform_indices = @transform_8, window_bounds = array<i64: 12, 8>}]} {
    %c0 = arith.constant 0 : index
    %c0_0 = arith.constant 0 : index
    %0 = vector.load %arg3[%c0, %c0_0] : memref<32x128xf32, #tpu.memory_space<vmem>>, vector<32x128xf32>
    %1 = tpu.iota {dimensions = array<i32: 1>} : vector<8x128xi32>
    %c64_i32 = arith.constant 64 : i32
    %2 = vector.broadcast %c64_i32 : i32 to vector<8x128xi32>
    %3 = arith.cmpi sge, %1, %2 : vector<8x128xi32>
    %c96_i32 = arith.constant 96 : i32
    %4 = vector.broadcast %c96_i32 : i32 to vector<8x128xi32>
    %5 = arith.cmpi slt, %1, %4 : vector<8x128xi32>
    %6 = arith.andi %3, %5 : vector<8x128xi1>
    %cst = arith.constant 1.000000e+00 : f32
    %cst_1 = arith.constant 5.000000e-01 : f32
    %7 = vector.broadcast %cst : f32 to vector<8x128xf32>
    %8 = vector.broadcast %cst_1 : f32 to vector<8x128xf32>
    %9 = arith.select %6, %7, %8 : vector<8x128xi1>, vector<8x128xf32>
    %cst_2 = arith.constant 0.000000e+00 : f32
    %cst_3 = arith.constant 5.000000e-01 : f32
    %10 = vector.broadcast %cst_2 : f32 to vector<8x128xf32>
    %11 = vector.broadcast %cst_3 : f32 to vector<8x128xf32>
    %12 = arith.select %6, %10, %11 : vector<8x128xi1>, vector<8x128xf32>
    %c0_4 = arith.constant 0 : index
    %c0_5 = arith.constant 0 : index
    %13 = vector.load %arg4[%c0_4, %c0_5] : memref<1x128xf32, #tpu.memory_space<vmem>>, vector<1x128xf32>
    %14 = vector.shape_cast %13 : vector<1x128xf32> to vector<1x128xf32>
    %15 = vector.broadcast %14 : vector<1x128xf32> to vector<8x128xf32>
    %c0_6 = arith.constant 0 : index
    %c0_7 = arith.constant 0 : index
    %16 = vector.load %arg1[%c0_6, %c0_7] : memref<8x33xf32, #tpu.memory_space<vmem>>, vector<8x33xf32>
    %c0_8 = arith.constant 0 : index
    %c0_9 = arith.constant 0 : index
    %17 = vector.load %arg2[%c0_8, %c0_9] : memref<33x1024xf32, #tpu.memory_space<vmem>>, vector<33x1024xf32>
    %cst_10 = arith.constant dense<0.000000e+00> : vector<8x1024xf32>
    %18 = tpu.matmul %16, %17, %cst_10 {dimension_numbers = #tpu.dot_dimension_numbers<[1], [0], [0], [1], [0, 0, 1, 1], [], []>} : vector<8x33xf32>, vector<33x1024xf32>, vector<8x1024xf32> -> vector<8x1024xf32>
    %19 = vector.extract_strided_slice %18 {offsets = [0, 0], sizes = [8, 128], strides = [1, 1]} : vector<8x1024xf32> to vector<8x128xf32>
    %20 = math.tanh %19 : vector<8x128xf32>
    %21 = arith.mulf %20, %9 : vector<8x128xf32>
    %22 = arith.addf %21, %12 : vector<8x128xf32>
    %23 = vector.extract_strided_slice %22 {offsets = [0, 0], sizes = [8, 32], strides = [1, 1]} : vector<8x128xf32> to vector<8x32xf32>
    %24 = vector.extract_strided_slice %22 {offsets = [0, 64], sizes = [8, 32], strides = [1, 1]} : vector<8x128xf32> to vector<8x32xf32>
    %25 = vector.extract_strided_slice %22 {offsets = [0, 96], sizes = [8, 32], strides = [1, 1]} : vector<8x128xf32> to vector<8x32xf32>
    %26 = arith.mulf %23, %24 : vector<8x32xf32>
    %27 = math.tanh %26 : vector<8x32xf32>
    %28 = arith.mulf %25, %27 : vector<8x32xf32>
    %cst_11 = arith.constant dense<0.000000e+00> : vector<8x128xf32>
    %29 = tpu.matmul %28, %0, %cst_11 {dimension_numbers = #tpu.dot_dimension_numbers<[1], [0], [0], [1], [0, 0, 1, 1], [], []>} : vector<8x32xf32>, vector<32x128xf32>, vector<8x128xf32> -> vector<8x128xf32>
    %30 = vector.extract_strided_slice %18 {offsets = [0, 128], sizes = [8, 128], strides = [1, 1]} : vector<8x1024xf32> to vector<8x128xf32>
    %31 = arith.addf %29, %30 : vector<8x128xf32>
    %32 = math.tanh %31 : vector<8x128xf32>
    %33 = arith.mulf %32, %9 : vector<8x128xf32>
    %34 = arith.addf %33, %12 : vector<8x128xf32>
    %35 = vector.extract_strided_slice %34 {offsets = [0, 0], sizes = [8, 32], strides = [1, 1]} : vector<8x128xf32> to vector<8x32xf32>
    %36 = vector.extract_strided_slice %34 {offsets = [0, 32], sizes = [8, 32], strides = [1, 1]} : vector<8x128xf32> to vector<8x32xf32>
    %37 = vector.extract_strided_slice %34 {offsets = [0, 64], sizes = [8, 32], strides = [1, 1]} : vector<8x128xf32> to vector<8x32xf32>
    %38 = vector.extract_strided_slice %34 {offsets = [0, 96], sizes = [8, 32], strides = [1, 1]} : vector<8x128xf32> to vector<8x32xf32>
    %39 = arith.mulf %36, %26 : vector<8x32xf32>
    %40 = arith.mulf %35, %37 : vector<8x32xf32>
    %41 = arith.addf %39, %40 : vector<8x32xf32>
    %42 = math.tanh %41 : vector<8x32xf32>
    %43 = arith.mulf %38, %42 : vector<8x32xf32>
    %cst_12 = arith.constant dense<0.000000e+00> : vector<8x128xf32>
    %44 = tpu.matmul %43, %0, %cst_12 {dimension_numbers = #tpu.dot_dimension_numbers<[1], [0], [0], [1], [0, 0, 1, 1], [], []>} : vector<8x32xf32>, vector<32x128xf32>, vector<8x128xf32> -> vector<8x128xf32>
    %45 = vector.extract_strided_slice %18 {offsets = [0, 256], sizes = [8, 128], strides = [1, 1]} : vector<8x1024xf32> to vector<8x128xf32>
    %46 = arith.addf %44, %45 : vector<8x128xf32>
    %47 = math.tanh %46 : vector<8x128xf32>
    %48 = arith.mulf %47, %9 : vector<8x128xf32>
    %49 = arith.addf %48, %12 : vector<8x128xf32>
    %50 = vector.extract_strided_slice %49 {offsets = [0, 0], sizes = [8, 32], strides = [1, 1]} : vector<8x128xf32> to vector<8x32xf32>
    %51 = vector.extract_strided_slice %49 {offsets = [0, 32], sizes = [8, 32], strides = [1, 1]} : vector<8x128xf32> to vector<8x32xf32>
    %52 = vector.extract_strided_slice %49 {offsets = [0, 64], sizes = [8, 32], strides = [1, 1]} : vector<8x128xf32> to vector<8x32xf32>
    %53 = vector.extract_strided_slice %49 {offsets = [0, 96], sizes = [8, 32], strides = [1, 1]} : vector<8x128xf32> to vector<8x32xf32>
    %54 = arith.mulf %51, %41 : vector<8x32xf32>
    %55 = arith.mulf %50, %52 : vector<8x32xf32>
    %56 = arith.addf %54, %55 : vector<8x32xf32>
    %57 = math.tanh %56 : vector<8x32xf32>
    %58 = arith.mulf %53, %57 : vector<8x32xf32>
    %cst_13 = arith.constant dense<0.000000e+00> : vector<8x128xf32>
    %59 = tpu.matmul %58, %0, %cst_13 {dimension_numbers = #tpu.dot_dimension_numbers<[1], [0], [0], [1], [0, 0, 1, 1], [], []>} : vector<8x32xf32>, vector<32x128xf32>, vector<8x128xf32> -> vector<8x128xf32>
    %60 = vector.extract_strided_slice %18 {offsets = [0, 384], sizes = [8, 128], strides = [1, 1]} : vector<8x1024xf32> to vector<8x128xf32>
    %61 = arith.addf %59, %60 : vector<8x128xf32>
    %62 = math.tanh %61 : vector<8x128xf32>
    %63 = arith.mulf %62, %9 : vector<8x128xf32>
    %64 = arith.addf %63, %12 : vector<8x128xf32>
    %65 = vector.extract_strided_slice %64 {offsets = [0, 0], sizes = [8, 32], strides = [1, 1]} : vector<8x128xf32> to vector<8x32xf32>
    %66 = vector.extract_strided_slice %64 {offsets = [0, 32], sizes = [8, 32], strides = [1, 1]} : vector<8x128xf32> to vector<8x32xf32>
    %67 = vector.extract_strided_slice %64 {offsets = [0, 64], sizes = [8, 32], strides = [1, 1]} : vector<8x128xf32> to vector<8x32xf32>
    %68 = vector.extract_strided_slice %64 {offsets = [0, 96], sizes = [8, 32], strides = [1, 1]} : vector<8x128xf32> to vector<8x32xf32>
    %69 = arith.mulf %66, %56 : vector<8x32xf32>
    %70 = arith.mulf %65, %67 : vector<8x32xf32>
    %71 = arith.addf %69, %70 : vector<8x32xf32>
    %72 = math.tanh %71 : vector<8x32xf32>
    %73 = arith.mulf %68, %72 : vector<8x32xf32>
    %cst_14 = arith.constant dense<0.000000e+00> : vector<8x128xf32>
    %74 = tpu.matmul %73, %0, %cst_14 {dimension_numbers = #tpu.dot_dimension_numbers<[1], [0], [0], [1], [0, 0, 1, 1], [], []>} : vector<8x32xf32>, vector<32x128xf32>, vector<8x128xf32> -> vector<8x128xf32>
    %75 = vector.extract_strided_slice %18 {offsets = [0, 512], sizes = [8, 128], strides = [1, 1]} : vector<8x1024xf32> to vector<8x128xf32>
    %76 = arith.addf %74, %75 : vector<8x128xf32>
    %77 = math.tanh %76 : vector<8x128xf32>
    %78 = arith.mulf %77, %9 : vector<8x128xf32>
    %79 = arith.addf %78, %12 : vector<8x128xf32>
    %80 = vector.extract_strided_slice %79 {offsets = [0, 0], sizes = [8, 32], strides = [1, 1]} : vector<8x128xf32> to vector<8x32xf32>
    %81 = vector.extract_strided_slice %79 {offsets = [0, 32], sizes = [8, 32], strides = [1, 1]} : vector<8x128xf32> to vector<8x32xf32>
    %82 = vector.extract_strided_slice %79 {offsets = [0, 64], sizes = [8, 32], strides = [1, 1]} : vector<8x128xf32> to vector<8x32xf32>
    %83 = vector.extract_strided_slice %79 {offsets = [0, 96], sizes = [8, 32], strides = [1, 1]} : vector<8x128xf32> to vector<8x32xf32>
    %84 = arith.mulf %81, %71 : vector<8x32xf32>
    %85 = arith.mulf %80, %82 : vector<8x32xf32>
    %86 = arith.addf %84, %85 : vector<8x32xf32>
    %87 = math.tanh %86 : vector<8x32xf32>
    %88 = arith.mulf %83, %87 : vector<8x32xf32>
    %cst_15 = arith.constant dense<0.000000e+00> : vector<8x128xf32>
    %89 = tpu.matmul %88, %0, %cst_15 {dimension_numbers = #tpu.dot_dimension_numbers<[1], [0], [0], [1], [0, 0, 1, 1], [], []>} : vector<8x32xf32>, vector<32x128xf32>, vector<8x128xf32> -> vector<8x128xf32>
    %90 = vector.extract_strided_slice %18 {offsets = [0, 640], sizes = [8, 128], strides = [1, 1]} : vector<8x1024xf32> to vector<8x128xf32>
    %91 = arith.addf %89, %90 : vector<8x128xf32>
    %92 = math.tanh %91 : vector<8x128xf32>
    %93 = arith.mulf %92, %9 : vector<8x128xf32>
    %94 = arith.addf %93, %12 : vector<8x128xf32>
    %95 = vector.extract_strided_slice %94 {offsets = [0, 0], sizes = [8, 32], strides = [1, 1]} : vector<8x128xf32> to vector<8x32xf32>
    %96 = vector.extract_strided_slice %94 {offsets = [0, 32], sizes = [8, 32], strides = [1, 1]} : vector<8x128xf32> to vector<8x32xf32>
    %97 = vector.extract_strided_slice %94 {offsets = [0, 64], sizes = [8, 32], strides = [1, 1]} : vector<8x128xf32> to vector<8x32xf32>
    %98 = vector.extract_strided_slice %94 {offsets = [0, 96], sizes = [8, 32], strides = [1, 1]} : vector<8x128xf32> to vector<8x32xf32>
    %99 = arith.mulf %96, %86 : vector<8x32xf32>
    %100 = arith.mulf %95, %97 : vector<8x32xf32>
    %101 = arith.addf %99, %100 : vector<8x32xf32>
    %102 = math.tanh %101 : vector<8x32xf32>
    %103 = arith.mulf %98, %102 : vector<8x32xf32>
    %cst_16 = arith.constant dense<0.000000e+00> : vector<8x128xf32>
    %104 = tpu.matmul %103, %0, %cst_16 {dimension_numbers = #tpu.dot_dimension_numbers<[1], [0], [0], [1], [0, 0, 1, 1], [], []>} : vector<8x32xf32>, vector<32x128xf32>, vector<8x128xf32> -> vector<8x128xf32>
    %105 = vector.extract_strided_slice %18 {offsets = [0, 768], sizes = [8, 128], strides = [1, 1]} : vector<8x1024xf32> to vector<8x128xf32>
    %106 = arith.addf %104, %105 : vector<8x128xf32>
    %107 = math.tanh %106 : vector<8x128xf32>
    %108 = arith.mulf %107, %9 : vector<8x128xf32>
    %109 = arith.addf %108, %12 : vector<8x128xf32>
    %110 = vector.extract_strided_slice %109 {offsets = [0, 0], sizes = [8, 32], strides = [1, 1]} : vector<8x128xf32> to vector<8x32xf32>
    %111 = vector.extract_strided_slice %109 {offsets = [0, 32], sizes = [8, 32], strides = [1, 1]} : vector<8x128xf32> to vector<8x32xf32>
    %112 = vector.extract_strided_slice %109 {offsets = [0, 64], sizes = [8, 32], strides = [1, 1]} : vector<8x128xf32> to vector<8x32xf32>
    %113 = vector.extract_strided_slice %109 {offsets = [0, 96], sizes = [8, 32], strides = [1, 1]} : vector<8x128xf32> to vector<8x32xf32>
    %114 = arith.mulf %111, %101 : vector<8x32xf32>
    %115 = arith.mulf %110, %112 : vector<8x32xf32>
    %116 = arith.addf %114, %115 : vector<8x32xf32>
    %117 = math.tanh %116 : vector<8x32xf32>
    %118 = arith.mulf %113, %117 : vector<8x32xf32>
    %cst_17 = arith.constant dense<0.000000e+00> : vector<8x128xf32>
    %119 = tpu.matmul %118, %0, %cst_17 {dimension_numbers = #tpu.dot_dimension_numbers<[1], [0], [0], [1], [0, 0, 1, 1], [], []>} : vector<8x32xf32>, vector<32x128xf32>, vector<8x128xf32> -> vector<8x128xf32>
    %120 = vector.extract_strided_slice %18 {offsets = [0, 896], sizes = [8, 128], strides = [1, 1]} : vector<8x1024xf32> to vector<8x128xf32>
    %121 = arith.addf %119, %120 : vector<8x128xf32>
    %122 = math.tanh %121 : vector<8x128xf32>
    %123 = arith.mulf %122, %9 : vector<8x128xf32>
    %124 = arith.addf %123, %12 : vector<8x128xf32>
    %125 = vector.extract_strided_slice %124 {offsets = [0, 0], sizes = [8, 32], strides = [1, 1]} : vector<8x128xf32> to vector<8x32xf32>
    %126 = vector.extract_strided_slice %124 {offsets = [0, 32], sizes = [8, 32], strides = [1, 1]} : vector<8x128xf32> to vector<8x32xf32>
    %127 = vector.extract_strided_slice %124 {offsets = [0, 64], sizes = [8, 32], strides = [1, 1]} : vector<8x128xf32> to vector<8x32xf32>
    %128 = vector.extract_strided_slice %124 {offsets = [0, 96], sizes = [8, 32], strides = [1, 1]} : vector<8x128xf32> to vector<8x32xf32>
    %129 = arith.mulf %126, %116 : vector<8x32xf32>
    %130 = arith.mulf %125, %127 : vector<8x32xf32>
    %131 = arith.addf %129, %130 : vector<8x32xf32>
    %132 = math.tanh %131 : vector<8x32xf32>
    %133 = arith.mulf %128, %132 : vector<8x32xf32>
    %134 = tpu.transpose %133, [1, 0] : vector<8x32xf32> -> vector<32x8xf32>
    %c0_18 = arith.constant 0 : index
    %c0_19 = arith.constant 0 : index
    %135 = vector.load %arg10[%c0_18, %c0_19] : memref<32x32xf32, #tpu.memory_space<vmem>>, vector<32x8xf32>
    tpu.vector_store %arg10[%c0_18, %c0_19], %134 {strides = array<i32>} : memref<32x32xf32, #tpu.memory_space<vmem>>, vector<32x8xf32>,
    %cst_20 = arith.constant dense<0.000000e+00> : vector<8x128xf32>
    %136 = tpu.matmul %133, %0, %cst_20 {dimension_numbers = #tpu.dot_dimension_numbers<[1], [0], [0], [1], [0, 0, 1, 1], [], []>} : vector<8x32xf32>, vector<32x128xf32>, vector<8x128xf32> -> vector<8x128xf32>
    %137 = arith.addf %136, %15 : vector<8x128xf32>
    %138 = math.tanh %137 : vector<8x128xf32>
    %139 = arith.mulf %138, %9 : vector<8x128xf32>
    %140 = arith.addf %139, %12 : vector<8x128xf32>
    %141 = vector.extract_strided_slice %140 {offsets = [0, 0], sizes = [8, 32], strides = [1, 1]} : vector<8x128xf32> to vector<8x32xf32>
    %142 = vector.extract_strided_slice %140 {offsets = [0, 32], sizes = [8, 32], strides = [1, 1]} : vector<8x128xf32> to vector<8x32xf32>
    %143 = vector.extract_strided_slice %140 {offsets = [0, 64], sizes = [8, 32], strides = [1, 1]} : vector<8x128xf32> to vector<8x32xf32>
    %144 = vector.extract_strided_slice %140 {offsets = [0, 96], sizes = [8, 32], strides = [1, 1]} : vector<8x128xf32> to vector<8x32xf32>
    %145 = arith.mulf %142, %131 : vector<8x32xf32>
    %146 = arith.mulf %141, %143 : vector<8x32xf32>
    %147 = arith.addf %145, %146 : vector<8x32xf32>
    %148 = math.tanh %147 : vector<8x32xf32>
    %149 = arith.mulf %144, %148 : vector<8x32xf32>
    %150 = tpu.transpose %149, [1, 0] : vector<8x32xf32> -> vector<32x8xf32>
    %c0_21 = arith.constant 0 : index
    %c8 = arith.constant 8 : index
    %151 = vector.load %arg10[%c0_21, %c8] : memref<32x32xf32, #tpu.memory_space<vmem>>, vector<32x8xf32>
    tpu.vector_store %arg10[%c0_21, %c8], %150 {strides = array<i32>} : memref<32x32xf32, #tpu.memory_space<vmem>>, vector<32x8xf32>,
    %cst_22 = arith.constant dense<0.000000e+00> : vector<8x128xf32>
    %152 = tpu.matmul %149, %0, %cst_22 {dimension_numbers = #tpu.dot_dimension_numbers<[1], [0], [0], [1], [0, 0, 1, 1], [], []>} : vector<8x32xf32>, vector<32x128xf32>, vector<8x128xf32> -> vector<8x128xf32>
    %153 = arith.addf %152, %15 : vector<8x128xf32>
    %154 = math.tanh %153 : vector<8x128xf32>
    %155 = arith.mulf %154, %9 : vector<8x128xf32>
    %156 = arith.addf %155, %12 : vector<8x128xf32>
    %157 = vector.extract_strided_slice %156 {offsets = [0, 0], sizes = [8, 32], strides = [1, 1]} : vector<8x128xf32> to vector<8x32xf32>
    %158 = vector.extract_strided_slice %156 {offsets = [0, 32], sizes = [8, 32], strides = [1, 1]} : vector<8x128xf32> to vector<8x32xf32>
    %159 = vector.extract_strided_slice %156 {offsets = [0, 64], sizes = [8, 32], strides = [1, 1]} : vector<8x128xf32> to vector<8x32xf32>
    %160 = vector.extract_strided_slice %156 {offsets = [0, 96], sizes = [8, 32], strides = [1, 1]} : vector<8x128xf32> to vector<8x32xf32>
    %161 = arith.mulf %158, %147 : vector<8x32xf32>
    %162 = arith.mulf %157, %159 : vector<8x32xf32>
    %163 = arith.addf %161, %162 : vector<8x32xf32>
    %164 = math.tanh %163 : vector<8x32xf32>
    %165 = arith.mulf %160, %164 : vector<8x32xf32>
    %166 = tpu.transpose %165, [1, 0] : vector<8x32xf32> -> vector<32x8xf32>
    %c0_23 = arith.constant 0 : index
    %c16 = arith.constant 16 : index
    %167 = vector.load %arg10[%c0_23, %c16] : memref<32x32xf32, #tpu.memory_space<vmem>>, vector<32x8xf32>
    tpu.vector_store %arg10[%c0_23, %c16], %166 {strides = array<i32>} : memref<32x32xf32, #tpu.memory_space<vmem>>, vector<32x8xf32>,
    %cst_24 = arith.constant dense<0.000000e+00> : vector<8x128xf32>
    %168 = tpu.matmul %165, %0, %cst_24 {dimension_numbers = #tpu.dot_dimension_numbers<[1], [0], [0], [1], [0, 0, 1, 1], [], []>} : vector<8x32xf32>, vector<32x128xf32>, vector<8x128xf32> -> vector<8x128xf32>
    %169 = arith.addf %168, %15 : vector<8x128xf32>
    %170 = math.tanh %169 : vector<8x128xf32>
    %171 = arith.mulf %170, %9 : vector<8x128xf32>
    %172 = arith.addf %171, %12 : vector<8x128xf32>
    %173 = vector.extract_strided_slice %172 {offsets = [0, 0], sizes = [8, 32], strides = [1, 1]} : vector<8x128xf32> to vector<8x32xf32>
    %174 = vector.extract_strided_slice %172 {offsets = [0, 32], sizes = [8, 32], strides = [1, 1]} : vector<8x128xf32> to vector<8x32xf32>
    %175 = vector.extract_strided_slice %172 {offsets = [0, 64], sizes = [8, 32], strides = [1, 1]} : vector<8x128xf32> to vector<8x32xf32>
    %176 = vector.extract_strided_slice %172 {offsets = [0, 96], sizes = [8, 32], strides = [1, 1]} : vector<8x128xf32> to vector<8x32xf32>
    %177 = arith.mulf %174, %163 : vector<8x32xf32>
    %178 = arith.mulf %173, %175 : vector<8x32xf32>
    %179 = arith.addf %177, %178 : vector<8x32xf32>
    %180 = math.tanh %179 : vector<8x32xf32>
    %181 = arith.mulf %176, %180 : vector<8x32xf32>
    %182 = tpu.transpose %181, [1, 0] : vector<8x32xf32> -> vector<32x8xf32>
    %c0_25 = arith.constant 0 : index
    %c24 = arith.constant 24 : index
    %183 = vector.load %arg10[%c0_25, %c24] : memref<32x32xf32, #tpu.memory_space<vmem>>, vector<32x8xf32>
    tpu.vector_store %arg10[%c0_25, %c24], %182 {strides = array<i32>} : memref<32x32xf32, #tpu.memory_space<vmem>>, vector<32x8xf32>,
    %c0_26 = arith.constant 0 : index
    %c0_27 = arith.constant 0 : index
    %184 = vector.load %arg10[%c0_26, %c0_27] : memref<32x32xf32, #tpu.memory_space<vmem>>, vector<32x32xf32>
    %cst_28 = arith.constant 0.000000e+00 : f32
    %185 = vector.broadcast %cst_28 : f32 to vector<32x32xf32>
    %186 = arith.cmpf ogt, %184, %185 : vector<32x32xf32>
    %187 = math.exp %184 : vector<32x32xf32>
    %cst_29 = arith.constant 1.000000e+00 : f32
    %188 = vector.broadcast %cst_29 : f32 to vector<32x32xf32>
    %189 = arith.subf %187, %188 : vector<32x32xf32>
    %190 = arith.select %186, %184, %189 : vector<32x32xi1>, vector<32x32xf32>
    %c0_30 = arith.constant 0 : index
    %c0_31 = arith.constant 0 : index
    %191 = vector.load %arg5[%c0_30, %c0_31] : memref<32x32xf32, #tpu.memory_space<vmem>>, vector<32x32xf32>
    %cst_32 = arith.constant dense<0.000000e+00> : vector<32x32xf32>
    %192 = tpu.matmul %191, %190, %cst_32 {dimension_numbers = #tpu.dot_dimension_numbers<[1], [0], [0], [1], [0, 0, 1, 1], [], []>} : vector<32x32xf32>, vector<32x32xf32>, vector<32x32xf32> -> vector<32x32xf32>
    %c0_33 = arith.constant 0 : index
    %c0_34 = arith.constant 0 : index
    %193 = vector.load %arg6[%c0_33, %c0_34] : memref<32x1xf32, #tpu.memory_space<vmem>>, vector<32x1xf32>
    %194 = vector.broadcast %193 : vector<32x1xf32> to vector<32x32xf32>
    %195 = arith.addf %192, %194 : vector<32x32xf32>
    %cst_35 = arith.constant 0.000000e+00 : f32
    %196 = vector.broadcast %cst_35 : f32 to vector<32x32xf32>
    %197 = arith.cmpf ogt, %195, %196 : vector<32x32xf32>
    %198 = math.exp %195 : vector<32x32xf32>
    %cst_36 = arith.constant 1.000000e+00 : f32
    %199 = vector.broadcast %cst_36 : f32 to vector<32x32xf32>
    %200 = arith.subf %198, %199 : vector<32x32xf32>
    %201 = arith.select %197, %195, %200 : vector<32x32xi1>, vector<32x32xf32>
    %c0_37 = arith.constant 0 : index
    %c0_38 = arith.constant 0 : index
    %202 = vector.load %arg7[%c0_37, %c0_38] : memref<3x32xf32, #tpu.memory_space<vmem>>, vector<3x32xf32>
    %cst_39 = arith.constant dense<0.000000e+00> : vector<3x32xf32>
    %203 = tpu.matmul %202, %201, %cst_39 {dimension_numbers = #tpu.dot_dimension_numbers<[1], [0], [0], [1], [0, 0, 1, 1], [], []>} : vector<3x32xf32>, vector<32x32xf32>, vector<3x32xf32> -> vector<3x32xf32>
    %c0_40 = arith.constant 0 : index
    %c0_41 = arith.constant 0 : index
    %204 = vector.load %arg8[%c0_40, %c0_41] : memref<3x1xf32, #tpu.memory_space<vmem>>, vector<3x1xf32>
    %205 = vector.broadcast %204 : vector<3x1xf32> to vector<3x32xf32>
    %206 = arith.addf %203, %205 : vector<3x32xf32>
    %207 = vector.extract_strided_slice %206 {offsets = [0, 0], sizes = [3, 8], strides = [1, 1]} : vector<3x32xf32> to vector<3x8xf32>
    %c0_42 = arith.constant 0 : index
    %c0_43 = arith.constant 0 : index
    %208 = vector.load %arg9[%c0_42, %c0_43] : memref<12x8xf32, #tpu.memory_space<vmem>>, vector<3x8xf32>
    tpu.vector_store %arg9[%c0_42, %c0_43], %207 {strides = array<i32>} : memref<12x8xf32, #tpu.memory_space<vmem>>, vector<3x8xf32>,
    %209 = vector.extract_strided_slice %206 {offsets = [0, 8], sizes = [3, 8], strides = [1, 1]} : vector<3x32xf32> to vector<3x8xf32>
    %c3 = arith.constant 3 : index
    %c0_44 = arith.constant 0 : index
    %210 = vector.load %arg9[%c3, %c0_44] : memref<12x8xf32, #tpu.memory_space<vmem>>, vector<3x8xf32>
    tpu.vector_store %arg9[%c3, %c0_44], %209 {strides = array<i32>} : memref<12x8xf32, #tpu.memory_space<vmem>>, vector<3x8xf32>,
    %211 = vector.extract_strided_slice %206 {offsets = [0, 16], sizes = [3, 8], strides = [1, 1]} : vector<3x32xf32> to vector<3x8xf32>
    %c6 = arith.constant 6 : index
    %c0_45 = arith.constant 0 : index
    %212 = vector.load %arg9[%c6, %c0_45] : memref<12x8xf32, #tpu.memory_space<vmem>>, vector<3x8xf32>
    tpu.vector_store %arg9[%c6, %c0_45], %211 {strides = array<i32>} : memref<12x8xf32, #tpu.memory_space<vmem>>, vector<3x8xf32>,
    %213 = vector.extract_strided_slice %206 {offsets = [0, 24], sizes = [3, 8], strides = [1, 1]} : vector<3x32xf32> to vector<3x8xf32>
    %c9 = arith.constant 9 : index
    %c0_46 = arith.constant 0 : index
    %214 = vector.load %arg9[%c9, %c0_46] : memref<12x8xf32, #tpu.memory_space<vmem>>, vector<3x8xf32>
    tpu.vector_store %arg9[%c9, %c0_46], %213 {strides = array<i32>} : memref<12x8xf32, #tpu.memory_space<vmem>>, vector<3x8xf32>,
    return
  }
  func.func @transform_0(%arg0: i32) -> (i32, i32) {
    %c0_i32 = arith.constant 0 : i32
    %c0_i32_0 = arith.constant 0 : i32
    return %arg0, %c0_i32 : i32, i32
  }
  func.func @transform_1(%arg0: i32) -> (i32, i32) {
    %c0_i32 = arith.constant 0 : i32
    %c0_i32_0 = arith.constant 0 : i32
    %c0_i32_1 = arith.constant 0 : i32
    return %c0_i32, %c0_i32_0 : i32, i32
  }
  func.func @transform_2(%arg0: i32) -> (i32, i32) {
    %c0_i32 = arith.constant 0 : i32
    %c0_i32_0 = arith.constant 0 : i32
    %c0_i32_1 = arith.constant 0 : i32
    return %c0_i32, %c0_i32_0 : i32, i32
  }
  func.func @transform_3(%arg0: i32) -> (i32, i32) {
    %c0_i32 = arith.constant 0 : i32
    %c0_i32_0 = arith.constant 0 : i32
    %c0_i32_1 = arith.constant 0 : i32
    return %c0_i32, %c0_i32_0 : i32, i32
  }
  func.func @transform_4(%arg0: i32) -> (i32, i32) {
    %c0_i32 = arith.constant 0 : i32
    %c0_i32_0 = arith.constant 0 : i32
    %c0_i32_1 = arith.constant 0 : i32
    return %c0_i32, %c0_i32_0 : i32, i32
  }
  func.func @transform_5(%arg0: i32) -> (i32, i32) {
    %c0_i32 = arith.constant 0 : i32
    %c0_i32_0 = arith.constant 0 : i32
    %c0_i32_1 = arith.constant 0 : i32
    return %c0_i32, %c0_i32_0 : i32, i32
  }
  func.func @transform_6(%arg0: i32) -> (i32, i32) {
    %c0_i32 = arith.constant 0 : i32
    %c0_i32_0 = arith.constant 0 : i32
    %c0_i32_1 = arith.constant 0 : i32
    return %c0_i32, %c0_i32_0 : i32, i32
  }
  func.func @transform_7(%arg0: i32) -> (i32, i32) {
    %c0_i32 = arith.constant 0 : i32
    %c0_i32_0 = arith.constant 0 : i32
    %c0_i32_1 = arith.constant 0 : i32
    return %c0_i32, %c0_i32_0 : i32, i32
  }
  func.func @transform_8(%arg0: i32) -> (i32, i32) {
    %c0_i32 = arith.constant 0 : i32
    %c0_i32_0 = arith.constant 0 : i32
    return %c0_i32, %arg0 : i32, i32
  }
}

</mosaic_0001>

<bundles_post_ra>
// kernel: model_citylearn_forward.1
= control target key start
LH: loop header
LB: loop body
LE: loop exit
PB: predicated region body
PF: predicated region fallthrough
CT: control target
= control target key end

     0   :  { %vm89_vm0 = vcmask 1040384   ;;  %vm85_vm1 = vcmask 269312   ;;  %v33_v6 = vlaneseq  ;;  %v1223_v9 = vmov 0.5   ;;  %s1225_s17 = smov 32   ;;  %s1226_s18 = smov 96   ;;  %s1646_s1 = inlined_call_operand.vmem [shape: f32[33,1024], index: 1, kind: input, shape index: {}]   ;;  %s1647_s0 = inlined_call_operand.vmem [shape: f32[8,33], index: 0, kind: input, shape index: {}]   ;;  %s1648_s2 = inlined_call_operand.vmem [shape: f32[32,128], index: 2, kind: input, shape index: {}]   ;;  %s1649_s3 = inlined_call_operand.vmem [shape: f32[1,128], index: 3, kind: input, shape index: {}]   ;;  %s1650_s5 = inlined_call_operand.vmem [shape: f32[32,1], index: 5, kind: input, shape index: {}]   ;;  %s1651_s4 = inlined_call_operand.vmem [shape: f32[32,32], index: 4, kind: input, shape index: {}]   ;;  %s1652_s7 = inlined_call_operand.vmem [shape: f32[3,1], index: 7, kind: input, shape index: {}]   ;;  %s1653_s6 = inlined_call_operand.vmem [shape: f32[3,32], index: 6, kind: input, shape index: {}]   ;;  %s1654_s8 = inlined_call_operand.vmem [shape: f32[12,8], index: 8, kind: output, shape index: {}]  }
   0x1   :  { %v77_v0 = vld [vmem:[%s1646_s1 + $0x100] sm:$0x1]  ;;  %v80_v18 = vld [vmem:[%s1646_s1 + $0x118] sm:$0x1]  ;;  %v78_v22 = vld [vmem:[%s1646_s1 + $0x108] sm:$0x1] }
   0x2   :  { %v69_v1 = vld [vmem:[%s1646_s1 + $0xc0] sm:$0xff]  ;;  %1108 = vmatpush.msk.msra.mxu0 %vm89_vm0, %v77_v0  ;;  %v34_v7 = vand.u32 127, %v33_v6  ;;  %v72_v19 = vld [vmem:[%s1646_s1 + $0xd8] sm:$0xff]  ;;  %1114 = vmatpush.msk.msra.mxu3 %vm89_vm0, %v80_v18  ;;  %v70_v23 = vld [vmem:[%s1646_s1 + $0xc8] sm:$0xff]  ;;  %vm291_vm5 = vcmask 261120   ;;  %s1228_s10 = smov 16  }
   0x3   :  { %v61_v2 = vld [vmem:[%s1646_s1 + $0x80] sm:$0xff]  ;;  %v64_v20 = vld [vmem:[%s1646_s1 + $0x98] sm:$0xff]  ;;  %1110 = vmatpush.msk.msra.mxu1 %vm89_vm0, %v78_v22  ;;  %v1361_v31 = vld [vmem:[%s1648_s2 + $0x10] sm:$0xff]  ;;  %vm644_vm6 = vcmask 64512   ;;  %vm743_vm7 = vcmask 130112   ;;  %vm842_vm8 = vcmask 195712  }
   0x4   :  { %126 = vmatpush.msra.mxu0 %v69_v1  ;;  %v53_v3 = vld [vmem:[%s1646_s1 + $0x40] sm:$0xff]  ;;  %vm35_vm2 = vcmp.ge.s32.totalorder %v34_v7, 64  ;;  %vm36_vm3 = vcmp.lt.s32.totalorder %v34_v7, 96  ;;  %186 = vmatpush.msra.mxu3 %v72_v19  ;;  %v56_v21 = vld [vmem:[%s1646_s1 + $0x58] sm:$0xff]  ;;  %v1367_v32 = vld [vmem:[%s1648_s2 + $0x8] sm:$0xff]  ;;  %vm941_vm9 = vcmask 261312  }
   0x5   :  { %v45_v4 = vld [vmem:[%s1646_s1] sm:$0xff]  ;;  %vm37_vm4 = vmand %vm35_vm2, %vm36_vm3  ;;  %v48_v24 = vld [vmem:[%s1646_s1 + $0x18] sm:$0xff]  ;;  %146 = vmatpush.msra.mxu1 %v70_v23  ;;  %vm1089_vm2 = vcmask 59392   ;;  %s1231_s28 = smov 112   ;;  %s1232_s29 = smov 120  }
   0x6   :  { %127 = vmatpush.msra.mxu0 %v61_v2  ;;  %v1298_v5 = vld [vmem:[%s1647_s0] sm:$0xff]  ;;  %v1302_v10 = vsel %vm37_vm4, 1.0, %v1223_v9  ;;  %v1304_v12 = vsel %vm37_vm4, 0.0, %v1223_v9  ;;  %s1224_s0 = smov 64   ;;  %187 = vmatpush.msra.mxu3 %v64_v20  ;;  %v84_v25 = vld [vmem:[%s1646_s1 + $0x138] sm:$0x1] }
   0x7   :  { %v76_v26 = vld [vmem:[%s1646_s1 + $0xf8] sm:$0xff]  ;;  %v1373_v33 = vld [vmem:[%s1648_s2] sm:$0xff]  ;;  %v62_v36 = vld [vmem:[%s1646_s1 + $0x88] sm:$0xff] }
   0x8   :  { %128 = vmatpush.msra.mxu0 %v53_v3  ;;  %188 = vmatpush.msra.mxu3 %v56_v21  ;;  %v68_v27 = vld [vmem:[%s1646_s1 + $0xb8] sm:$0xff]  ;;  %v54_v37 = vld [vmem:[%s1646_s1 + $0x48] sm:$0xff]  ;;  %v79_v57 = vld [vmem:[%s1646_s1 + $0x110] sm:$0x1] }
   0x9   :  { %v60_v28 = vld [vmem:[%s1646_s1 + $0x78] sm:$0xff]  ;;  %147 = vmatpush.msra.mxu1 %v62_v36  ;;  %v46_v38 = vld [vmem:[%s1646_s1 + $0x8] sm:$0xff]  ;;  %v71_v59 = vld [vmem:[%s1646_s1 + $0xd0] sm:$0xff] }
   0xa   :  { %129 = vmatpush.msra.mxu0 %v45_v4  ;;  %189 = vmatpush.msra.mxu3 %v48_v24  ;;  %v52_v29 = vld [vmem:[%s1646_s1 + $0x38] sm:$0xff]  ;;  %v82_v55 = vld [vmem:[%s1646_s1 + $0x128] sm:$0x1]  ;;  %v63_v60 = vld [vmem:[%s1646_s1 + $0x90] sm:$0xff] }
   0xb   :  { %1109 = vmatmul.msk.f32.vlgmr.msra.gmra.mxu0 %vm85_vm1, %v1298_v5  ;;  %1115 = vmatmul.msk.f32.vlgmr.msra.gmra.mxu3 %vm85_vm1, %v1298_v5  ;;  %v1354_v30 = vld [vmem:[%s1648_s2 + $0x18] sm:$0xff]  ;;  %v74_v56 = vld [vmem:[%s1646_s1 + $0xe8] sm:$0xff]  ;;  %v55_v62 = vld [vmem:[%s1646_s1 + $0x50] sm:$0xff] }
   0xc   :  { %1122 = vmatpush.msk.msrb.mxu3 %vm89_vm0, %v84_v25  ;;  %148 = vmatpush.msra.mxu1 %v54_v37  ;;  %v66_v58 = vld [vmem:[%s1646_s1 + $0xa8] sm:$0xff]  ;;  %v47_v0 = vld [vmem:[%s1646_s1 + $0x10] sm:$0xff] }
   0xd   :  { %1112 = vmatpush.msk.msrb.mxu0 %vm89_vm0, %v79_v57  ;;  %v58_v61 = vld [vmem:[%s1646_s1 + $0x68] sm:$0xff] }
   0xe   :  { %266 = vmatpush.msrb.mxu3 %v76_v26  ;;  %149 = vmatpush.msra.mxu1 %v46_v38  ;;  %v50_v63 = vld [vmem:[%s1646_s1 + $0x28] sm:$0xff]  ;;  %v81_v38 = vld [vmem:[%s1646_s1 + $0x120] sm:$0x1] }
   0xf   :  { %1111 = vmatmul.msk.f32.vlgmr.msra.gmra.mxu1 %vm85_vm1, %v1298_v5  ;;  %166 = vmatpush.msrb.mxu0 %v71_v59 }
  0x10   :  { %267 = vmatpush.msrb.mxu3 %v68_v27  ;;  %1118 = vmatpush.msk.msrb.mxu1 %vm89_vm0, %v82_v55 }
  0x11   :  { %167 = vmatpush.msrb.mxu0 %v63_v60 }
  0x12   :  { %268 = vmatpush.msrb.mxu3 %v60_v28  ;;  %226 = vmatpush.msrb.mxu1 %v74_v56 }
  0x13   :  { %168 = vmatpush.msrb.mxu0 %v55_v62 }
  0x14   :  { %269 = vmatpush.msrb.mxu3 %v52_v29  ;;  %227 = vmatpush.msrb.mxu1 %v66_v58 }
  0x15   :  { %1123 = vmatmul.msk.f32.vlgmr.msrb.gmra.mxu3 %vm85_vm1, %v1298_v5  ;;  %169 = vmatpush.msrb.mxu0 %v47_v0 }
  0x16   :  { %306 = vmatpush.msra.mxu3 %v1354_v30  ;;  %228 = vmatpush.msrb.mxu1 %v58_v61 }
  0x17   :  { %1113 = vmatmul.msk.f32.vlgmr.msrb.gmra.mxu0 %vm85_vm1, %v1298_v5 }
  0x18   :  { %307 = vmatpush.msra.mxu3 %v1361_v31  ;;  %229 = vmatpush.msrb.mxu1 %v50_v63 }
  0x19   :  { %1119 = vmatmul.msk.f32.vlgmr.msrb.gmra.mxu1 %vm85_vm1, %v1298_v5  ;;  %1116 = vmatpush.msk.msra.mxu0 %vm89_vm0, %v81_v38 }
  0x1a   :  { %308 = vmatpush.msra.mxu3 %v1367_v32  ;;  %355 = vmatpush.msra.mxu1 %v1354_v30 }
  0x1c   :  { %309 = vmatpush.msra.mxu3 %v1373_v33  ;;  %356 = vmatpush.msra.mxu1 %v1361_v31 }
  0x1e   :  { %445 = vmatpush.msrb.mxu3 %v1354_v30  ;;  %357 = vmatpush.msra.mxu1 %v1367_v32 }
  0x20   :  { %446 = vmatpush.msrb.mxu3 %v1361_v31  ;;  %358 = vmatpush.msra.mxu1 %v1373_v33 }
  0x22   :  { %447 = vmatpush.msrb.mxu3 %v1367_v32  ;;  %400 = vmatpush.msrb.mxu1 %v1354_v30 }
  0x24   :  { %448 = vmatpush.msrb.mxu3 %v1373_v33  ;;  %401 = vmatpush.msrb.mxu1 %v1361_v31 }
  0x26   :  { %402 = vmatpush.msrb.mxu1 %v1367_v32 }
  0x28   :  { %403 = vmatpush.msrb.mxu1 %v1373_v33 }
  0x88   :  { %v131_v8 = vpop.f32.mrf.mxu0 }
  0x89   :  { %1163 = vtanh.f32 %v131_v8 }
  0x8c   :  { %v151_v42 = vpop.f32.mrf.mxu1 }
  0x8e   :  { %v1398_v40 = vpop.f32.mrf.mxu3 }
  0x8f   :  { %v1164_v11 = vpop.eup %1163 }
  0x90   :  { %v275_v13 = vmul.f32 %v1164_v11, %v1302_v10 }
  0x92   :  { %v276_v14 = vadd.f32 %v275_v13, %v1304_v12 }
  0x94   :  { %278 = vrot.lane.b32.xlu0 %v276_v14, %s1224_s0  ;;  %v171_v6 = vpop.f32.mrf.mxu0 }
  0x96   :  { %v1457_v4 = vpop.f32.mrf.mxu1 }
  0x98   :  { %v1400_v41 = vpop.f32.mrf.mxu3 }
 0x106   :  { %v279_v15 = vpop.permute.xlu0 %278 }
 0x107   :  { %v281_v16 = vmul.f32 %v279_v15, %v276_v14 }
 0x109   :  { %1165 = vtanh.f32 %v281_v16  ;;  %318 = vrot.lane.b32.xlu2 %v281_v16, %s1225_s17 }
 0x10f   :  { %v1166_v17 = vpop.eup %1165 }
 0x110   :  { %284 = vrot.lane.b32.xlu0 %v1166_v17, %s1226_s18 }
 0x163   :  { %v319_v50 = vpop.permute.xlu2 %318 }
 0x182   :  { %v285_v34 = vpop.permute.xlu0 %284 }
 0x183   :  { %v287_v35 = vmul.f32 %v285_v34, %v276_v14 }
 0x185   :  { %289 = vrot.lane.b32.xlu1 %v287_v35, %s1225_s17 }
 0x1f7   :  { %v290_v39 = vpop.permute.xlu1 %289 }
 0x1f8   :  { %1124 = vmatmul.msk.f32.vlgmr.msra.gmra.mxu3 %vm291_vm5, %v290_v39  ;;  %v73_v39 = vld [vmem:[%s1646_s1 + $0xe0] sm:$0xff] }
 0x1f9   :  { %663 = vmatpush.msra.mxu3 %v1354_v30  ;;  %206 = vmatpush.msra.mxu0 %v73_v39 }
 0x1fb   :  { %664 = vmatpush.msra.mxu3 %v1361_v31 }
 0x1fd   :  { %665 = vmatpush.msra.mxu3 %v1367_v32 }
 0x1ff   :  { %666 = vmatpush.msra.mxu3 %v1373_v33 }
 0x27b   :  { %v311_v43 = vpop.f32.mrf.mxu3 }
 0x27c   :  { %v312_v44 = vadd.f32 %v311_v43, %v151_v42  ;;  %v65_v43 = vld [vmem:[%s1646_s1 + $0xa0] sm:$0xff] }
 0x27d   :  { %207 = vmatpush.msra.mxu0 %v65_v43 }
 0x27e   :  { %1167 = vtanh.f32 %v312_v44  ;;  %v57_v44 = vld [vmem:[%s1646_s1 + $0x60] sm:$0xff] }
 0x27f   :  { %208 = vmatpush.msra.mxu0 %v57_v44 }
 0x284   :  { %v1168_v45 = vpop.eup %1167 }
 0x285   :  { %v315_v46 = vmul.f32 %v1168_v45, %v1302_v10  ;;  %v49_v45 = vld [vmem:[%s1646_s1 + $0x20] sm:$0xff] }
 0x286   :  { %209 = vmatpush.msra.mxu0 %v49_v45 }
 0x287   :  { %v316_v47 = vadd.f32 %v315_v46, %v1304_v12  ;;  %1117 = vmatmul.msk.f32.vlgmr.msra.gmra.mxu0 %vm85_vm1, %v1298_v5 }
 0x288   :  { %490 = vmatpush.msrb.mxu0 %v1354_v30 }
 0x289   :  { %323 = vrot.lane.b32.xlu1 %v316_v47, %s1224_s0  ;;  %v321_v51 = vmul.f32 %v319_v50, %v316_v47 }
 0x28a   :  { %491 = vmatpush.msrb.mxu0 %v1361_v31 }
 0x28c   :  { %492 = vmatpush.msrb.mxu0 %v1367_v32 }
 0x28e   :  { %493 = vmatpush.msrb.mxu0 %v1373_v33 }
 0x290   :  { %762 = vmatpush.msra.mxu0 %v1354_v30 }
 0x292   :  { %763 = vmatpush.msra.mxu0 %v1361_v31 }
 0x294   :  { %764 = vmatpush.msra.mxu0 %v1367_v32 }
 0x296   :  { %765 = vmatpush.msra.mxu0 %v1373_v33 }
 0x2fb   :  { %v324_v48 = vpop.permute.xlu1 %323 }
 0x2fc   :  { %v326_v49 = vmul.f32 %v324_v48, %v316_v47 }
 0x2fe   :  { %328 = vrot.lane.b32.xlu2 %v326_v49, %s1225_s17 }
 0x358   :  { %v329_v52 = vpop.permute.xlu2 %328 }
 0x359   :  { %v331_v53 = vadd.f32 %v329_v52, %v321_v51 }
 0x35b   :  { %1169 = vtanh.f32 %v331_v53 }
 0x361   :  { %v1170_v54 = vpop.eup %1169 }
 0x362   :  { %334 = vrot.lane.b32.xlu0 %v1170_v54, %s1224_s0 }
 0x3d4   :  { %v335_v1 = vpop.permute.xlu0 %334 }
 0x3d5   :  { %v337_v2 = vmul.f32 %v335_v1, %v316_v47  ;;  %v211_v47 = vpop.f32.mrf.mxu0 }
 0x3d7   :  { %339 = vrot.lane.b32.xlu1 %v337_v2, %s1225_s17 }
 0x449   :  { %v340_v3 = vpop.permute.xlu1 %339 }
 0x44a   :  { %1125 = vmatmul.msk.f32.vlgmr.msra.gmra.mxu1 %vm291_vm5, %v340_v3 }
 0x44b   :  { %535 = vmatpush.msra.mxu1 %v1354_v30 }
 0x44d   :  { %536 = vmatpush.msra.mxu1 %v1361_v31 }
 0x44f   :  { %537 = vmatpush.msra.mxu1 %v1367_v32 }
 0x451   :  { %538 = vmatpush.msra.mxu1 %v1373_v33 }
 0x4c7   :  { %v360_v7 = vpop.f32.mrf.mxu1 }
 0x4c8   :  { %v361_v8 = vadd.f32 %v360_v7, %v171_v6 }
 0x4ca   :  { %1171 = vtanh.f32 %v361_v8 }
 0x4d0   :  { %v1172_v9 = vpop.eup %1171 }
 0x4d1   :  { %v364_v11 = vmul.f32 %v1172_v9, %v1302_v10 }
 0x4d3   :  { %v365_v13 = vadd.f32 %v364_v11, %v1304_v12 }
 0x4d5   :  { %368 = vrot.lane.b32.xlu2 %v365_v13, %s1224_s0  ;;  %v366_v16 = vmul.f32 %v365_v13, %v331_v53 }
 0x52f   :  { %v369_v14 = vpop.permute.xlu2 %368 }
 0x530   :  { %v371_v15 = vmul.f32 %v369_v14, %v365_v13  ;;  %v67_v14 = vld [vmem:[%s1646_s1 + $0xb0] sm:$0xff] }
 0x532   :  { %373 = vrot.lane.b32.xlu0 %v371_v15, %s1225_s17  ;;  %v59_v15 = vld [vmem:[%s1646_s1 + $0x70] sm:$0xff] }
 0x5a4   :  { %v374_v17 = vpop.permute.xlu0 %373 }
 0x5a5   :  { %v376_v18 = vadd.f32 %v374_v17, %v366_v16  ;;  %v51_v16 = vld [vmem:[%s1646_s1 + $0x30] sm:$0xff] }
 0x5a7   :  { %1173 = vtanh.f32 %v376_v18 }
 0x5ad   :  { %v1174_v19 = vpop.eup %1173 }
 0x5ae   :  { %379 = vrot.lane.b32.xlu1 %v1174_v19, %s1224_s0 }
 0x620   :  { %v380_v20 = vpop.permute.xlu1 %379 }
 0x621   :  { %v382_v21 = vmul.f32 %v380_v20, %v365_v13  ;;  %v75_v13 = vld [vmem:[%s1646_s1 + $0xf0] sm:$0xff] }
 0x623   :  { %384 = vrot.lane.b32.xlu2 %v382_v21, %s1225_s17 }
 0x67d   :  { %v385_v22 = vpop.permute.xlu2 %384 }
 0x67e   :  { %1126 = vmatmul.msk.f32.vlgmr.msrb.gmra.mxu1 %vm291_vm5, %v385_v22 }
 0x67f   :  { %861 = vmatpush.msrb.mxu1 %v1354_v30 }
 0x681   :  { %862 = vmatpush.msrb.mxu1 %v1361_v31 }
 0x683   :  { %863 = vmatpush.msrb.mxu1 %v1367_v32 }
 0x685   :  { %864 = vmatpush.msrb.mxu1 %v1373_v33 }
 0x6fb   :  { %v405_v23 = vpop.f32.mrf.mxu1 }
 0x6fc   :  { %v406_v24 = vadd.f32 %v405_v23, %v1398_v40 }
 0x6fe   :  { %1175 = vtanh.f32 %v406_v24 }
 0x704   :  { %v1176_v25 = vpop.eup %1175 }
 0x705   :  { %v409_v26 = vmul.f32 %v1176_v25, %v1302_v10 }
 0x707   :  { %v410_v27 = vadd.f32 %v409_v26, %v1304_v12 }
 0x709   :  { %413 = vrot.lane.b32.xlu0 %v410_v27, %s1224_s0  ;;  %v411_v34 = vmul.f32 %v410_v27, %v376_v18 }
 0x77b   :  { %v414_v28 = vpop.permute.xlu0 %413 }
 0x77c   :  { %v416_v29 = vmul.f32 %v414_v28, %v410_v27 }
 0x77e   :  { %418 = vrot.lane.b32.xlu1 %v416_v29, %s1225_s17 }
 0x7f0   :  { %v419_v35 = vpop.permute.xlu1 %418 }
 0x7f1   :  { %v421_v36 = vadd.f32 %v419_v35, %v411_v34 }
 0x7f3   :  { %1177 = vtanh.f32 %v421_v36 }
 0x7f9   :  { %v1178_v37 = vpop.eup %1177 }
 0x7fa   :  { %424 = vrot.lane.b32.xlu2 %v1178_v37, %s1224_s0 }
 0x854   :  { %v425_v40 = vpop.permute.xlu2 %424 }
 0x855   :  { %v427_v42 = vmul.f32 %v425_v40, %v410_v27 }
 0x857   :  { %429 = vrot.lane.b32.xlu0 %v427_v42, %s1225_s17 }
 0x8c9   :  { %v430_v46 = vpop.permute.xlu0 %429 }
 0x8ca   :  { %1127 = vmatmul.msk.f32.vlgmr.msrb.gmra.mxu3 %vm291_vm5, %v430_v46 }
 0x94d   :  { %v450_v48 = vpop.f32.mrf.mxu3 }
 0x94e   :  { %v451_v49 = vadd.f32 %v450_v48, %v211_v47  ;;  %v1162_v48 = vld [vmem:[%s1649_s3] ss:$0 sm:$0xff]  ;;  %s1227_s3 = smov 8  }
 0x950   :  { %1179 = vtanh.f32 %v451_v49 }
 0x956   :  { %v1180_v50 = vpop.eup %1179 }
 0x957   :  { %v454_v51 = vmul.f32 %v1180_v50, %v1302_v10 }
 0x959   :  { %v455_v52 = vadd.f32 %v454_v51, %v1304_v12 }
 0x95b   :  { %458 = vrot.lane.b32.xlu1 %v455_v52, %s1224_s0  ;;  %v456_v55 = vmul.f32 %v455_v52, %v421_v36 }
 0x9cd   :  { %v459_v53 = vpop.permute.xlu1 %458 }
 0x9ce   :  { %v461_v54 = vmul.f32 %v459_v53, %v455_v52 }
 0x9d0   :  { %463 = vrot.lane.b32.xlu2 %v461_v54, %s1225_s17 }
 0xa2a   :  { %v464_v56 = vpop.permute.xlu2 %463 }
 0xa2b   :  { %v466_v57 = vadd.f32 %v464_v56, %v456_v55 }
 0xa2d   :  { %1181 = vtanh.f32 %v466_v57 }
 0xa33   :  { %v1182_v58 = vpop.eup %1181 }
 0xa34   :  { %469 = vrot.lane.b32.xlu0 %v1182_v58, %s1224_s0 }
 0xaa6   :  { %v470_v59 = vpop.permute.xlu0 %469 }
 0xaa7   :  { %v472_v60 = vmul.f32 %v470_v59, %v455_v52 }
 0xaa9   :  { %474 = vrot.lane.b32.xlu1 %v472_v60, %s1225_s17 }
 0xb1b   :  { %v475_v61 = vpop.permute.xlu1 %474 }
 0xb1c   :  { %1128 = vmatmul.msk.f32.vlgmr.msrb.gmra.mxu0 %vm291_vm5, %v475_v61 }
 0xb99   :  { %v495_v62 = vpop.f32.mrf.mxu0 }
 0xb9a   :  { %v496_v63 = vadd.f32 %v495_v62, %v1457_v4  ;;  %v83_v4 = vld [vmem:[%s1646_s1 + $0x130] sm:$0x1]  ;;  %s1233_s1 = smov 104  }
 0xb9b   :  { %1120 = vmatpush.msk.msra.mxu2 %vm89_vm0, %v83_v4 }
 0xb9c   :  { %1183 = vtanh.f32 %v496_v63 }
 0xb9d   :  { %246 = vmatpush.msra.mxu2 %v75_v13 }
 0xb9f   :  { %247 = vmatpush.msra.mxu2 %v67_v14 }
 0xba1   :  { %248 = vmatpush.msra.mxu2 %v59_v15 }
 0xba2   :  { %v1184_v0 = vpop.eup %1183 }
 0xba3   :  { %v499_v1 = vmul.f32 %v1184_v0, %v1302_v10  ;;  %249 = vmatpush.msra.mxu2 %v51_v16 }
 0xba4   :  { %1121 = vmatmul.msk.f32.vlgmr.msra.gmra.mxu2 %vm85_vm1, %v1298_v5 }
 0xba5   :  { %v500_v2 = vadd.f32 %v499_v1, %v1304_v12  ;;  %580 = vmatpush.msrb.mxu2 %v1354_v30 }
 0xba7   :  { %503 = vrot.lane.b32.xlu2 %v500_v2, %s1224_s0  ;;  %v501_v7 = vmul.f32 %v500_v2, %v466_v57  ;;  %581 = vmatpush.msrb.mxu2 %v1361_v31 }
 0xba9   :  { %582 = vmatpush.msrb.mxu2 %v1367_v32 }
 0xbab   :  { %583 = vmatpush.msrb.mxu2 %v1373_v33 }
 0xc01   :  { %v504_v3 = vpop.permute.xlu2 %503 }
 0xc02   :  { %v506_v6 = vmul.f32 %v504_v3, %v500_v2 }
 0xc04   :  { %508 = vrot.lane.b32.xlu0 %v506_v6, %s1225_s17 }
 0xc27   :  { %v251_v20 = vpop.f32.mrf.mxu2 }
 0xc76   :  { %v509_v8 = vpop.permute.xlu0 %508 }
 0xc77   :  { %v511_v9 = vadd.f32 %v509_v8, %v501_v7 }
 0xc79   :  { %1185 = vtanh.f32 %v511_v9 }
 0xc7f   :  { %v1186_v11 = vpop.eup %1185 }
 0xc80   :  { %514 = vrot.lane.b32.xlu1 %v1186_v11, %s1224_s0 }
 0xcf2   :  { %v515_v17 = vpop.permute.xlu1 %514 }
 0xcf3   :  { %v517_v18 = vmul.f32 %v515_v17, %v500_v2 }
 0xcf5   :  { %519 = vrot.lane.b32.xlu2 %v517_v18, %s1225_s17 }
 0xd4f   :  { %v520_v19 = vpop.permute.xlu2 %519 }
 0xd50   :  { %1129 = vmatmul.msk.f32.vlgmr.msra.gmra.mxu1 %vm291_vm5, %v520_v19 }
 0xdcd   :  { %v540_v21 = vpop.f32.mrf.mxu1 }
 0xdce   :  { %v541_v22 = vadd.f32 %v540_v21, %v251_v20 }
 0xdd0   :  { %1187 = vtanh.f32 %v541_v22 }
 0xdd6   :  { %v1188_v5 = vpop.eup %1187 }
 0xdd7   :  { %v544_v30 = vmul.f32 %v1188_v5, %v1302_v10 }
 0xdd9   :  { %v545_v31 = vadd.f32 %v544_v30, %v1304_v12 }
 0xddb   :  { %548 = vrot.lane.b32.xlu0 %v545_v31, %s1224_s0  ;;  %v546_v23 = vmul.f32 %v545_v31, %v511_v9 }
 0xe4d   :  { %v549_v32 = vpop.permute.xlu0 %548 }
 0xe4e   :  { %v551_v33 = vmul.f32 %v549_v32, %v545_v31 }
 0xe50   :  { %553 = vrot.lane.b32.xlu1 %v551_v33, %s1225_s17 }
 0xec2   :  { %v554_v24 = vpop.permute.xlu1 %553 }
 0xec3   :  { %v556_v25 = vadd.f32 %v554_v24, %v546_v23 }
 0xec5   :  { %1189 = vtanh.f32 %v556_v25 }
 0xecb   :  { %v1190_v26 = vpop.eup %1189 }
 0xecc   :  { %559 = vrot.lane.b32.xlu2 %v1190_v26, %s1224_s0 }
 0xf26   :  { %v560_v27 = vpop.permute.xlu2 %559 }
 0xf27   :  { %v562_v28 = vmul.f32 %v560_v27, %v545_v31 }
 0xf29   :  { %564 = vrot.lane.b32.xlu0 %v562_v28, %s1225_s17 }
 0xf9b   :  { %v565_v29 = vpop.permute.xlu0 %564 }
 0xf9c   :  { %1130 = vmatmul.msk.f32.vlgmr.msrb.gmra.mxu2 %vm291_vm5, %v565_v29 }
0x101f   :  { %v585_v34 = vpop.f32.mrf.mxu2 }
0x1020   :  { %v586_v35 = vadd.f32 %v585_v34, %v1400_v41 }
0x1022   :  { %1191 = vtanh.f32 %v586_v35 }
0x1028   :  { %v1192_v36 = vpop.eup %1191 }
0x1029   :  { %v589_v37 = vmul.f32 %v1192_v36, %v1302_v10 }
0x102b   :  { %v590_v38 = vadd.f32 %v589_v37, %v1304_v12 }
0x102d   :  { %593 = vrot.lane.b32.xlu1 %v590_v38, %s1224_s0  ;;  %v591_v42 = vmul.f32 %v590_v38, %v556_v25 }
0x109f   :  { %v594_v39 = vpop.permute.xlu1 %593 }
0x10a0   :  { %v596_v40 = vmul.f32 %v594_v39, %v590_v38 }
0x10a2   :  { %598 = vrot.lane.b32.xlu2 %v596_v40, %s1225_s17 }
0x10fc   :  { %v599_v43 = vpop.permute.xlu2 %598 }
0x10fd   :  { %v601_v44 = vadd.f32 %v599_v43, %v591_v42 }
0x10ff   :  { %1193 = vtanh.f32 %v601_v44 }
0x1105   :  { %v1194_v45 = vpop.eup %1193 }
0x1106   :  { %604 = vrot.lane.b32.xlu0 %v1194_v45, %s1224_s0 }
0x1178   :  { %v605_v41 = vpop.permute.xlu0 %604 }
0x1179   :  { %v607_v46 = vmul.f32 %v605_v41, %v590_v38 }
0x117b   :  { %609 = vrot.lane.b32.xlu1 %v607_v46, %s1225_s17 }
0x11ed   :  { %v1555_v47 = vpop.permute.xlu1 %609 }
0x11ee   :  { %1131 = vmatmul.msk.f32.vlgmr.msra.gmra.mxu3 %vm291_vm5, %v1555_v47 }
0x1271   :  { %v668_v49 = vpop.f32.mrf.mxu3 }
0x1272   :  { %v669_v50 = vadd.f32 %v1162_v48, %v668_v49 }
0x1274   :  { %1195 = vtanh.f32 %v669_v50 }
0x127a   :  { %v1196_v51 = vpop.eup %1195 }
0x127b   :  { %v672_v52 = vmul.f32 %v1196_v51, %v1302_v10 }
0x127d   :  { %v673_v53 = vadd.f32 %v672_v52, %v1304_v12 }
0x127f   :  { %676 = vrot.lane.b32.xlu2 %v673_v53, %s1224_s0  ;;  %v674_v56 = vmul.f32 %v673_v53, %v601_v44 }
0x12d9   :  { %v677_v54 = vpop.permute.xlu2 %676 }
0x12da   :  { %v679_v55 = vmul.f32 %v677_v54, %v673_v53 }
0x12dc   :  { %681 = vrot.lane.b32.xlu0 %v679_v55, %s1225_s17 }
0x134e   :  { %v682_v57 = vpop.permute.xlu0 %681 }
0x134f   :  { %v684_v58 = vadd.f32 %v682_v57, %v674_v56 }
0x1351   :  { %1197 = vtanh.f32 %v684_v58 }
0x1357   :  { %v1198_v59 = vpop.eup %1197 }
0x1358   :  { %687 = vrot.lane.b32.xlu1 %v1198_v59, %s1224_s0 }
0x13ca   :  { %v688_v60 = vpop.permute.xlu1 %687 }
0x13cb   :  { %v690_v61 = vmul.f32 %v688_v60, %v673_v53 }
0x13cd   :  { %692 = vrot.lane.b32.xlu2 %v690_v61, %s1225_s17 }
0x1427   :  { %v693_v62 = vpop.permute.xlu2 %692 }
0x1428   :  { %1132 = vmatmul.msk.f32.vlgmr.msra.gmra.mxu0 %vm291_vm5, %v693_v62 }
0x14a5   :  { %v767_v63 = vpop.f32.mrf.mxu0 }
0x14a6   :  { %v768_v0 = vadd.f32 %v1162_v48, %v767_v63 }
0x14a8   :  { %1199 = vtanh.f32 %v768_v0  ;;  %v977_v0 = vld [vmem:[%s1650_s5 + $0x18] sm:$0xff] }
0x14ae   :  { %v1200_v1 = vpop.eup %1199 }
0x14af   :  { %v771_v2 = vmul.f32 %v1200_v1, %v1302_v10 }
0x14b1   :  { %v772_v3 = vadd.f32 %v771_v2, %v1304_v12 }
0x14b3   :  { %775 = vrot.lane.b32.xlu0 %v772_v3, %s1224_s0  ;;  %v773_v8 = vmul.f32 %v772_v3, %v684_v58  ;;  %v1230_v58 = vmov 0  }
0x1525   :  { %v776_v6 = vpop.permute.xlu0 %775 }
0x1526   :  { %v778_v7 = vmul.f32 %v776_v6, %v772_v3 }
0x1528   :  { %780 = vrot.lane.b32.xlu1 %v778_v7, %s1225_s17 }
0x159a   :  { %v781_v9 = vpop.permute.xlu1 %780 }
0x159b   :  { %v783_v11 = vadd.f32 %v781_v9, %v773_v8 }
0x159d   :  { %1201 = vtanh.f32 %v783_v11 }
0x15a3   :  { %v1202_v4 = vpop.eup %1201 }
0x15a4   :  { %786 = vrot.lane.b32.xlu2 %v1202_v4, %s1224_s0  ;;  %v975_v4 = vld [vmem:[%s1650_s5 + $0x8] sm:$0xff] }
0x15fe   :  { %v787_v13 = vpop.permute.xlu2 %786 }
0x15ff   :  { %v789_v14 = vmul.f32 %v787_v13, %v772_v3  ;;  %v976_v13 = vld [vmem:[%s1650_s5 + $0x10] sm:$0xff] }
0x1601   :  { %791 = vrot.lane.b32.xlu0 %v789_v14, %s1225_s17 }
0x1673   :  { %v792_v15 = vpop.permute.xlu0 %791 }
0x1674   :  { %1133 = vmatmul.msk.f32.vlgmr.msrb.gmra.mxu1 %vm291_vm5, %v792_v15 }
0x16f1   :  { %v866_v16 = vpop.f32.mrf.mxu1 }
0x16f2   :  { %v867_v17 = vadd.f32 %v1162_v48, %v866_v16 }
0x16f4   :  { %1203 = vtanh.f32 %v867_v17  ;;  %v970_v17 = vld [vmem:[%s1651_s4] sm:$0xff] }
0x16fa   :  { %v1204_v18 = vpop.eup %1203 }
0x16fb   :  { %v870_v19 = vmul.f32 %v1204_v18, %v1302_v10 }
0x16fd   :  { %v871_v20 = vadd.f32 %v870_v19, %v1304_v12  ;;  %v1060_v19 = vld [vmem:[%s1652_s7] sm:$0x7] }
0x16ff   :  { %874 = vrot.lane.b32.xlu1 %v871_v20, %s1224_s0  ;;  %v872_v5 = vmul.f32 %v871_v20, %v783_v11 }
0x1771   :  { %v875_v21 = vpop.permute.xlu1 %874 }
0x1772   :  { %v877_v22 = vmul.f32 %v875_v21, %v871_v20  ;;  %v971_v21 = vld [vmem:[%s1651_s4 + $0x8] sm:$0xff] }
0x1774   :  { %879 = vrot.lane.b32.xlu2 %v877_v22, %s1225_s17  ;;  %v972_v22 = vld [vmem:[%s1651_s4 + $0x10] sm:$0xff] }
0x179a   :  { %695 = vxpose.xlu2.b32.start.end [1/1] (short) (narrow) %v693_v62, 32 }
0x17ce   :  { %v880_v30 = vpop.permute.xlu2 %879 }
0x17cf   :  { %v882_v31 = vadd.f32 %v880_v30, %v872_v5  ;;  %v973_v5 = vld [vmem:[%s1651_s4 + $0x18] sm:$0xff] }
0x17d1   :  { %1205 = vtanh.f32 %v882_v31 }
0x17d7   :  { %v1206_v32 = vpop.eup %1205 }
0x17d8   :  { %885 = vrot.lane.b32.xlu0 %v1206_v32, %s1224_s0  ;;  %s1229_s0 = smov 24  }
0x17fa   :  { %794 = vxpose.xlu0.b32.start.end [1/1] (short) (narrow) %v792_v15, 32 }
0x17fc   :  { %1160 = vset.pattern.permute.xlu2 %v1230_v58 }
0x1833   :  { %v711_v33 = vpop.trf.xlu2 }
0x183b   :  { %v712_v23 = vpop.trf.xlu2 }
0x1843   :  { %v713_v10 = vpop.trf.xlu2 }
0x1844   :  { %735 = vrot.lane.b32.xlu1 %v713_v10, %s1227_s3 }
0x184a   :  { %v886_v24 = vpop.permute.xlu0 %885 }
0x184b   :  { %v714_v12 = vpop.trf.xlu2  ;;  %v888_v28 = vmul.f32 %v886_v24, %v871_v20  ;;  %v974_v20 = vld [vmem:[%s1650_s5] sm:$0xff] }
0x184c   :  { %737 = vrot.lane.b32.xlu2 %v714_v12, %s1227_s3 }
0x1854   :  { %733 = vrot.lane.b32.xlu2 %v712_v23, %s1227_s3 }
0x185c   :  { %731 = vrot.lane.b32.xlu2 %v711_v33, %s1227_s3 }
0x189e   :  { %v810_v25 = vpop.trf.xlu0 }
0x18a6   :  { %v811_v26 = vpop.trf.xlu0  ;;  %v738_v43 = vpop.permute.xlu2 %737 }
0x18ae   :  { %v812_v27 = vpop.trf.xlu0  ;;  %v734_v45 = vpop.permute.xlu2 %733 }
0x18af   :  { %834 = vrot.lane.b32.xlu1 %v812_v27, %s1228_s10 }
0x18b6   :  { %v736_v29 = vpop.permute.xlu1 %735  ;;  %v813_v37 = vpop.trf.xlu0 }
0x18b7   :  { %832 = vrot.lane.b32.xlu1 %v811_v26, %s1228_s10  ;;  %836 = vrot.lane.b32.xlu0 %v813_v37, %s1228_s10  ;;  %v732_v46 = vpop.permute.xlu2 %731 }
0x18bf   :  { %890 = vrot.lane.b32.xlu1 %v888_v28, %s1225_s17 }
0x1921   :  { %v835_v34 = vpop.permute.xlu1 %834 }
0x1929   :  { %v833_v35 = vpop.permute.xlu1 %832  ;;  %v837_v44 = vpop.permute.xlu0 %836 }
0x1931   :  { %v891_v36 = vpop.permute.xlu1 %890 }
0x1932   :  { %893 = vxpose.xlu1.b32.start.end [1/1] (short) (narrow) %v891_v36, 32 }
0x1985   :  { %1159 = vset.pattern.permute.xlu1 %v1230_v58 }
0x19a4   :  { %830 = vrot.lane.b32.xlu1 %v810_v25, %s1228_s10 }
0x19ac   :  { %995 = vperm.xlu1 %1159, %v977_v0  }
0x19b4   :  { %985 = vperm.xlu1 %1159, %v975_v4  }
0x19bc   :  { %1063 = vperm.xlu1 %1159, %v1060_v19  }
0x19d6   :  { %v909_v38 = vpop.trf.xlu1 }
0x19de   :  { %v910_v39 = vpop.trf.xlu1 }
0x19df   :  { %931 = vrot.lane.b32.xlu0 %v910_v39, %s1229_s0 }
0x19e6   :  { %v911_v40 = vpop.trf.xlu1 }
0x19e7   :  { %933 = vrot.lane.b32.xlu0 %v911_v40, %s1229_s0 }
0x19ee   :  { %v912_v42 = vpop.trf.xlu1 }
0x19ef   :  { %935 = vrot.lane.b32.xlu2 %v912_v42, %s1229_s0 }
0x19f7   :  { %929 = vrot.lane.b32.xlu2 %v909_v38, %s1229_s0 }
0x19ff   :  { %990 = vperm.xlu2 %1160, %v976_v13  }
0x1a07   :  { %980 = vperm.xlu2 %1160, %v974_v20  }
0x1a09   :  { %612 = vxpose.xlu0.b32.start.end [1/1] (short) (narrow) %v1555_v47, 32 }
0x1a16   :  { %v831_v51 = vpop.permute.xlu1 %830 }
0x1a1e   :  { %v996_v31 = vpop.permute.xlu1 %995 }
0x1a26   :  { %v986_v10 = vpop.permute.xlu1 %985 }
0x1a49   :  { %v936_v49 = vpop.permute.xlu2 %935 }
0x1a51   :  { %v932_v41 = vpop.permute.xlu0 %931  ;;  %v930_v52 = vpop.permute.xlu2 %929 }
0x1a59   :  { %v934_v48 = vpop.permute.xlu0 %933  ;;  %v991_v33 = vpop.permute.xlu2 %990 }
0x1a61   :  { %v981_v24 = vpop.permute.xlu2 %980 }
0x1a70   :  { %1161 = vset.pattern.permute.xlu0 %v1230_v58 }
0x1aad   :  { %v628_v50 = vpop.trf.xlu0 }
0x1aae   :  { %645 = vst.msk [vmem:[#allocation2] sm:$0xff] %vm644_vm6, %v628_v50 }
0x1aaf   :  { %744 = vst.msk [vmem:[#allocation2] sm:$0xff] %vm743_vm7, %v732_v46 }
0x1ab0   :  { %843 = vst.msk [vmem:[#allocation2] sm:$0xff] %vm842_vm8, %v831_v51  ;;  %v1064_v51 = vpop.permute.xlu1 %1063 }
0x1ab1   :  { %942 = vst.msk [vmem:[#allocation2] sm:$0xff] %vm941_vm9, %v930_v52 }
0x1ab5   :  { %v629_v47 = vpop.trf.xlu0 }
0x1ab6   :  { %646 = vst.msk [vmem:[#allocation2 + $0x8] sm:$0xff] %vm644_vm6, %v629_v47 }
0x1ab7   :  { %745 = vst.msk [vmem:[#allocation2 + $0x8] sm:$0xff] %vm743_vm7, %v734_v45 }
0x1ab8   :  { %844 = vst.msk [vmem:[#allocation2 + $0x8] sm:$0xff] %vm842_vm8, %v833_v35  ;;  %v946_v60 = vld [vmem:[#allocation2] sm:$0xff] }
0x1ab9   :  { %943 = vst.msk [vmem:[#allocation2 + $0x8] sm:$0xff] %vm941_vm9, %v932_v41  ;;  %v954_v63 = vmul.f32 1.442695, %v946_v60  ;;  %vm950_vm13 = vcmp.gt.f32.partialorder %v946_v60, 0.0 }
0x1abd   :  { %v630_v53 = vpop.trf.xlu0 }
0x1abe   :  { %647 = vst.msk [vmem:[#allocation2 + $0x10] sm:$0xff] %vm644_vm6, %v630_v53 }
0x1abf   :  { %746 = vst.msk [vmem:[#allocation2 + $0x10] sm:$0xff] %vm743_vm7, %v736_v29 }
0x1ac0   :  { %845 = vst.msk [vmem:[#allocation2 + $0x10] sm:$0xff] %vm842_vm8, %v835_v34  ;;  %v947_v56 = vld [vmem:[#allocation2 + $0x8] sm:$0xff] }
0x1ac1   :  { %944 = vst.msk [vmem:[#allocation2 + $0x10] sm:$0xff] %vm941_vm9, %v934_v48  ;;  %v956_v59 = vmul.f32 1.442695, %v947_v56  ;;  %vm951_vm12 = vcmp.gt.f32.partialorder %v947_v56, 0.0 }
0x1ac5   :  { %v631_v54 = vpop.trf.xlu0 }
0x1ac6   :  { %648 = vst.msk [vmem:[#allocation2 + $0x18] sm:$0xff] %vm644_vm6, %v631_v54 }
0x1ac7   :  { %747 = vst.msk [vmem:[#allocation2 + $0x18] sm:$0xff] %vm743_vm7, %v738_v43 }
0x1ac8   :  { %846 = vst.msk [vmem:[#allocation2 + $0x18] sm:$0xff] %vm842_vm8, %v837_v44  ;;  %v948_v55 = vld [vmem:[#allocation2 + $0x10] sm:$0xff] }
0x1ac9   :  { %945 = vst.msk [vmem:[#allocation2 + $0x18] sm:$0xff] %vm941_vm9, %v936_v49  ;;  %v958_v57 = vmul.f32 1.442695, %v948_v55  ;;  %vm952_vm11 = vcmp.gt.f32.partialorder %v948_v55, 0.0  ;;  %v1059_v49 = vld [vmem:[%s1653_s6] sm:$0x7] }
0x1acb   :  { %1207 = vpow2.f32 %v958_v57 }
0x1acc   :  { %1209 = vpow2.f32 %v956_v59 }
0x1ad0   :  { %v949_v61 = vld [vmem:[#allocation2 + $0x18] sm:$0xff] }
0x1ad1   :  { %v960_v62 = vmul.f32 1.442695, %v949_v61  ;;  %v1208_v1 = vpop.eup %1207  ;;  %vm953_vm10 = vcmp.gt.f32.partialorder %v949_v61, 0.0 }
0x1ad2   :  { %v1210_v2 = vpop.eup %1209  ;;  %v1136_v7 = vadd.f32 -1.0, %v1208_v1 }
0x1ad3   :  { %1211 = vpow2.f32 %v960_v62  ;;  %v1135_v11 = vadd.f32 -1.0, %v1210_v2 }
0x1ad4   :  { %1213 = vpow2.f32 %v954_v63  ;;  %v968_v14 = vsel %vm952_vm11, %v948_v55, %v1136_v7 }
0x1ad5   :  { %v967_v16 = vsel %vm951_vm12, %v947_v56, %v1135_v11 }
0x1ad9   :  { %v1212_v3 = vpop.eup %1211 }
0x1ada   :  { %v1137_v6 = vadd.f32 -1.0, %v1212_v3  ;;  %v1214_v8 = vpop.eup %1213 }
0x1adb   :  { %v1134_v15 = vadd.f32 -1.0, %v1214_v8 }
0x1adc   :  { %v969_v9 = vsel %vm953_vm10, %v949_v61, %v1137_v6 }
0x1add   :  { %1022 = vmatpush.msra.mxu2 %v969_v9  ;;  %v966_v18 = vsel %vm950_vm13, %v946_v60, %v1134_v15 }
0x1adf   :  { %1023 = vmatpush.msra.mxu2 %v968_v14 }
0x1ae1   :  { %1024 = vmatpush.msra.mxu2 %v967_v16 }
0x1ae3   :  { %1025 = vmatpush.msra.mxu2 %v966_v18 }
0x1ae4   :  { %1138 = vmatmul.msk.f32.vlgmr.msra.gmra.mxu2 %vm291_vm5, %v970_v17 }
0x1aec   :  { %1139 = vmatmul.msk.f32.gmra.mxu2 %vm291_vm5, %v971_v21 }
0x1af4   :  { %1140 = vmatmul.msk.f32.gmra.mxu2 %vm291_vm5, %v972_v22 }
0x1afc   :  { %1141 = vmatmul.msk.f32.gmra.mxu2 %vm291_vm5, %v973_v5 }
0x1b67   :  { %v1027_v30 = vpop.f32.mrf.mxu2 }
0x1b68   :  { %v1028_v26 = vadd.f32 %v1027_v30, %v981_v24 }
0x1b6a   :  { %v1043_v35 = vmul.f32 1.442695, %v1028_v26  ;;  %vm1039_vm1 = vcmp.gt.f32.partialorder %v1028_v26, 0.0 }
0x1b6f   :  { %v1030_v32 = vpop.f32.mrf.mxu2 }
0x1b70   :  { %v1031_v25 = vadd.f32 %v1030_v32, %v986_v10 }
0x1b72   :  { %v1045_v28 = vmul.f32 1.442695, %v1031_v25  ;;  %vm1040_vm0 = vcmp.gt.f32.partialorder %v1031_v25, 0.0 }
0x1b77   :  { %v1033_v23 = vpop.f32.mrf.mxu2 }
0x1b78   :  { %v1034_v12 = vadd.f32 %v1033_v23, %v991_v33 }
0x1b7a   :  { %v1047_v27 = vmul.f32 1.442695, %v1034_v12  ;;  %vm1041_vm15 = vcmp.gt.f32.partialorder %v1034_v12, 0.0 }
0x1b7c   :  { %1215 = vpow2.f32 %v1047_v27 }
0x1b7d   :  { %1217 = vpow2.f32 %v1045_v28 }
0x1b7f   :  { %v1036_v29 = vpop.f32.mrf.mxu2 }
0x1b80   :  { %v1037_v34 = vadd.f32 %v1036_v29, %v996_v31 }
0x1b82   :  { %v1049_v36 = vmul.f32 1.442695, %v1037_v34  ;;  %v1216_v37 = vpop.eup %1215  ;;  %vm1042_vm14 = vcmp.gt.f32.partialorder %v1037_v34, 0.0 }
0x1b83   :  { %v1218_v38 = vpop.eup %1217  ;;  %v1144_v42 = vadd.f32 -1.0, %v1216_v37 }
0x1b84   :  { %1219 = vpow2.f32 %v1049_v36  ;;  %v1143_v45 = vadd.f32 -1.0, %v1218_v38 }
0x1b85   :  { %1221 = vpow2.f32 %v1043_v35  ;;  %v1057_v41 = vsel %vm1041_vm15, %v1034_v12, %v1144_v42 }
0x1b86   :  { %v1056_v48 = vsel %vm1040_vm0, %v1031_v25, %v1143_v45 }
0x1b8a   :  { %v1220_v39 = vpop.eup %1219 }
0x1b8b   :  { %v1145_v40 = vadd.f32 -1.0, %v1220_v39  ;;  %v1222_v43 = vpop.eup %1221 }
0x1b8c   :  { %v1142_v46 = vadd.f32 -1.0, %v1222_v43 }
0x1b8d   :  { %v1058_v44 = vsel %vm1042_vm14, %v1037_v34, %v1145_v40 }
0x1b8e   :  { %1081 = vmatpush.msrb.mxu3 %v1058_v44  ;;  %v1055_v50 = vsel %vm1039_vm1, %v1028_v26, %v1142_v46 }
0x1b90   :  { %1082 = vmatpush.msrb.mxu3 %v1057_v41 }
0x1b92   :  { %1083 = vmatpush.msrb.mxu3 %v1056_v48 }
0x1b94   :  { %1084 = vmatpush.msrb.mxu3 %v1055_v50 }
0x1b95   :  { %1146 = vmatmul.msk.f32.vlgmr.msrb.gmra.mxu3 %vm291_vm5, %v1059_v49 }
0x1c18   :  { %v1086_v52 = vpop.f32.mrf.mxu3 }
0x1c19   :  { %v1087_v47 = vadd.f32 %v1086_v52, %v1064_v51 }
0x1c1b   :  { %1096 = vrot.lane.b32.xlu1 %v1087_v47, %s1231_s28  ;;  %1092 = vrot.lane.b32.xlu2 %v1087_v47, %s1232_s29  ;;  %1090 = vst.msk [vmem:[%s1654_s8] sm:$0x7] %vm1089_vm2, %v1087_v47 }
0x1c23   :  { %1100 = vrot.lane.b32.xlu2 %v1087_v47, %s1233_s1 }
0x1c75   :  { %v1093_v53 = vpop.permute.xlu2 %1092 }
0x1c76   :  { %1095 = vst.msk [vmem:[%s1654_s8 + $0x3] sm:$0x7] %vm1089_vm2, %v1093_v53 }
0x1c7d   :  { %v1101_v54 = vpop.permute.xlu2 %1100 }
0x1c7e   :  { %1103 = vst.msk [vmem:[%s1654_s8 + $0x9] sm:$0x7] %vm1089_vm2, %v1101_v54 }
0x1c8d   :  { %v1097_v55 = vpop.permute.xlu1 %1096 }
0x1c8e   :  { %1099 = vst.msk [vmem:[%s1654_s8 + $0x6] sm:$0x7] %vm1089_vm2, %v1097_v55 }

</bundles_post_ra>
